<compile_context>
chip_gen: v5e
topology: v5e:2x2
jax: 0.10.0
libtpu: 0.0.40
codegen_flags: <defaults>
</compile_context>

<pallas_src>
import functools

import jax
import jax.numpy as jnp
from jax.experimental import pallas as pl
from jax.experimental.pallas import tpu as pltpu

_NEG_BIG = -1e30                      # finite "-inf" (avoids inf-inf NaNs)
_VMEM_LIMIT = 32 * 1024 * 1024        # safe on v5e/v6e (128 MiB) and v7x (64 MiB)


# --------------------------------------------------------------------------
# Pass A: online softmax statistics over dim=0 (max m, sum-of-exp l).
# --------------------------------------------------------------------------
def _softmax_stats_kernel(attrs_ref, all_ref, a_ref, m_ref, l_ref, e_all_ref,
                          *, alpha, n_valid, tile_n):
    i = pl.program_id(0)

    @pl.when(i == 0)
    def _init():
        m_ref[...] = jnp.full((1, 1), _NEG_BIG, jnp.float32)
        l_ref[...] = jnp.zeros((1, 1), jnp.float32)
        # `all @ a2` is identical for every row/tile: compute it exactly once.
        e_all_ref[...] = jnp.sum(all_ref[...] * a_ref[1:2, :],
                                 axis=1, keepdims=True)

    attrs = attrs_ref[...]                                  # (tile_n, F)
    a1 = a_ref[0:1, :]                                      # (1, F)

    # e = leakyrelu(attrs @ a1 + all @ a2): width-1 matmul done on the VPU
    # (elementwise mul) + XLU lane reduce instead of wasting the MXU.
    e = jnp.sum(attrs * a1, axis=1, keepdims=True) + e_all_ref[...]   # (tile_n,1)
    e = jnp.where(e > 0, e, alpha * e)                      # LeakyReLU(alpha)

    # Mask rows beyond the true N (padding added by the wrapper).
    row = i * tile_n + jax.lax.broadcasted_iota(jnp.int32, (tile_n, 1), 0)
    e = jnp.where(row < n_valid, e, _NEG_BIG)

    # Online (running max / rescaled sum) accumulation across tiles.
    m_prev = m_ref[...]
    m_new = jnp.maximum(m_prev, jnp.max(e, axis=0, keepdims=True))
    l_ref[...] = (l_ref[...] * jnp.exp(m_prev - m_new)
                  + jnp.sum(jnp.exp(e - m_new), axis=0, keepdims=True))
    m_ref[...] = m_new


# --------------------------------------------------------------------------
# Pass B: apply attention and write the output (embarrassingly parallel).
# --------------------------------------------------------------------------
def _apply_kernel(attrs_ref, all_ref, a_ref, m_ref, l_ref, out_ref, *, alpha):
    attrs = attrs_ref[...]                                  # (tile_n, F)
    allv = all_ref[...]                                     # (1, F)
    a1 = a_ref[0:1, :]
    a2 = a_ref[1:2, :]

    # Recompute e (attrs tile is already in VMEM; this pass is HBM-bound so
    # the VPU/XLU work is free filler).
    e = (jnp.sum(attrs * a1, axis=1, keepdims=True)
         + jnp.sum(allv * a2, axis=1, keepdims=True))       # (tile_n, 1)
    e = jnp.where(e > 0, e, alpha * e)

    # Softmax denominator reciprocal on the EUP slot; one Newton step restores
    # full f32 precision while keeping the divide off the VALU.
    lv = l_ref[...]                                         # (1, 1)
    inv_l = pl.reciprocal(lv, approx=True)
    inv_l = inv_l * (2.0 - lv * inv_l)

    attention = jnp.exp(e - m_ref[...]) * inv_l             # (tile_n, 1)
    out_ref[...] = attrs - attention * allv


# --------------------------------------------------------------------------
# Wrapper
# --------------------------------------------------------------------------
def _round_up(x, m):
    return ((x + m - 1) // m) * m


def _pick_tile_n(n, feat):
    # Keep ~6 (tile_n, F) f32 buffers (double-buffered in + out + slack) under
    # ~12 MiB so even v5e's 16 MiB scoped-VMEM default is safe; >=512-row
    # tiles reach ~85% of HBM roofline when N is large.
    budget_bytes = 12 * 1024 * 1024
    rows = budget_bytes // (6 * feat * 4)
    rows = max(8, min(512, (rows // 8) * 8))
    return min(rows, _round_up(n, 8))


def cont_attention_layer(attrs, all_vec, a, *, alpha):
    """attrs: (N, F) f32, all_vec: (1, F) f32, a: (2F, 1) f32 -> (N, F) f32."""
    n, feat = attrs.shape
    assert all_vec.shape == (1, feat)
    assert a.shape == (2 * feat, 1)

    # Lane-major weight layout: row 0 multiplies attrs, row 1 multiplies `all`.
    a2d = a.reshape(2, feat)

    tile_n = _pick_tile_n(n, feat)
    n_pad = _round_up(n, tile_n)
    nt = n_pad // tile_n
    attrs_p = attrs if n_pad == n else jnp.pad(attrs, ((0, n_pad - n), (0, 0)))

    # ---- Pass A: softmax stats (sequential reduction over the tile axis) ----
    stats_kernel = functools.partial(
        _softmax_stats_kernel, alpha=alpha, n_valid=n, tile_n=tile_n)
    m, l = pl.pallas_call(
        stats_kernel,
        out_shape=(jax.ShapeDtypeStruct((1, 1), jnp.float32),
                   jax.ShapeDtypeStruct((1, 1), jnp.float32)),
        grid=(nt,),
        in_specs=[
            pl.BlockSpec((tile_n, feat), lambda i: (i, 0)),
            pl.BlockSpec((1, feat), lambda i: (0, 0)),
            pl.BlockSpec((2, feat), lambda i: (0, 0)),
        ],
        out_specs=(
            pl.BlockSpec((1, 1), lambda i: (0, 0)),
            pl.BlockSpec((1, 1), lambda i: (0, 0)),
        ),
        scratch_shapes=[pltpu.VMEM((1, 1), jnp.float32)],   # cached `all @ a2`
        compiler_params=pltpu.CompilerParams(
            dimension_semantics=("arbitrary",),
            vmem_limit_bytes=_VMEM_LIMIT),
    )(attrs_p, all_vec, a2d)

    # ---- Pass B: apply attention (parallel over tiles; both TCs on v7x) ----
    apply_kernel = functools.partial(_apply_kernel, alpha=alpha)
    out_p = pl.pallas_call(
        apply_kernel,
        out_shape=jax.ShapeDtypeStruct((n_pad, feat), jnp.float32),
        grid=(nt,),
        in_specs=[
            pl.BlockSpec((tile_n, feat), lambda i: (i, 0)),
            pl.BlockSpec((1, feat), lambda i: (0, 0)),
            pl.BlockSpec((2, feat), lambda i: (0, 0)),
            pl.BlockSpec((1, 1), lambda i: (0, 0)),
            pl.BlockSpec((1, 1), lambda i: (0, 0)),
        ],
        out_specs=pl.BlockSpec((tile_n, feat), lambda i: (i, 0)),
        compiler_params=pltpu.CompilerParams(
            dimension_semantics=("parallel",),
            vmem_limit_bytes=_VMEM_LIMIT),
    )(attrs_p, all_vec, a2d, m, l)

    return out_p[:n]
    # Note: for the tiny per-node hier-GAT call sites (N=8, F=16) the right
    # real-world move is batching many independent (attrs, all) problems into
    # one pallas_call with a leading parallel grid axis so tiles are lane-dense.


# --------------------------------------------------------------------------
# Pure-JAX reference
# --------------------------------------------------------------------------
def _reference(attrs, all_vec, a, alpha):
    n = attrs.shape[0]
    alls = jnp.tile(all_vec, (n, 1))
    combina = jnp.concatenate([attrs, alls], axis=1)
    e = combina @ a
    e = jnp.where(e > 0, e, alpha * e)
    attention = jax.nn.softmax(e, axis=0)
    return attrs - attention * alls


if __name__ == "__main__":
    alpha = 0.2
    key = jax.random.PRNGKey(0)

    def make_case(k, n, feat):
        k1, k2, k3 = jax.random.split(k, 3)
        attrs = jax.random.normal(k1, (n, feat), dtype=jnp.float32)
        all_vec = jax.random.normal(k2, (1, feat), dtype=jnp.float32)
        hidden = 2 * feat
        gain = 1.414
        bound = gain * (6.0 / (1 + hidden)) ** 0.5     # xavier_uniform_(gain)
        a = jax.random.uniform(k3, (hidden, 1), dtype=jnp.float32,
                               minval=-bound, maxval=bound)
        return attrs, all_vec, a

    # Small module-typical case + a multi-tile case (exercises padding,
    # cross-tile online softmax and the parallel apply pass).
    cases = [(8, 16), (2000, 128)]
    keys = jax.random.split(key, len(cases))
    for (n, feat), k in zip(cases, keys):
        attrs, all_vec, a = make_case(k, n, feat)
        out = jax.block_until_ready(
            cont_attention_layer(attrs, all_vec, a, alpha=alpha))
        ref = _reference(attrs, all_vec, a, alpha)
        assert out.shape == (n, feat)
        assert jnp.allclose(out, ref, atol=1e-4, rtol=1e-4), \
            f"mismatch vs reference for N={n}, F={feat}"

    print("KERNEL_OK")
</pallas_src>

<mosaic_0001>
module attributes {stable_mosaic.version = 11 : i64} {
  func.func @_softmax_stats_kernel(%arg0: i32, %arg1: memref<8x16xf32, #tpu.memory_space<vmem>>, %arg2: memref<1x16xf32, #tpu.memory_space<vmem>>, %arg3: memref<2x16xf32, #tpu.memory_space<vmem>>, %arg4: memref<1x1xf32, #tpu.memory_space<vmem>>, %arg5: memref<1x1xf32, #tpu.memory_space<vmem>>, %arg6: memref<1x1xf32, #tpu.memory_space<vmem>>) attributes {dimension_semantics = [#tpu.dimension_semantics<arbitrary>], iteration_bounds = array<i64: 1>, scalar_prefetch = 0 : i64, scratch_operands = 1 : i64, tpu.core_type = #tpu.core_type<tc>, window_params = [{transform_indices = @transform_0, window_bounds = array<i64: 8, 16>}, {pipeline_mode = #tpu.pipeline_mode<synchronous>, transform_indices = @transform_1, window_bounds = array<i64: 1, 16>}, {pipeline_mode = #tpu.pipeline_mode<synchronous>, transform_indices = @transform_2, window_bounds = array<i64: 2, 16>}, {pipeline_mode = #tpu.pipeline_mode<synchronous>, transform_indices = @transform_3, window_bounds = array<i64: 1, 1>}, {pipeline_mode = #tpu.pipeline_mode<synchronous>, transform_indices = @transform_4, window_bounds = array<i64: 1, 1>}]} {
    %c0_i32 = arith.constant 0 : i32
    %0 = arith.cmpi eq, %arg0, %c0_i32 : i32
    %1 = arith.extui %0 : i1 to i32
    %c0_i32_0 = arith.constant 0 : i32
    %2 = arith.cmpi ne, %1, %c0_i32_0 : i32
    scf.if %2 {
      %cst_20 = arith.constant -1.000000e+30 : f32
      %41 = vector.broadcast %cst_20 : f32 to vector<1x1xf32>
      %c0_21 = arith.constant 0 : index
      %c0_22 = arith.constant 0 : index
      %42 = vector.load %arg4[%c0_21, %c0_22] : memref<1x1xf32, #tpu.memory_space<vmem>>, vector<1x1xf32>
      tpu.vector_store %arg4[%c0_21, %c0_22], %41 {strides = array<i32>} : memref<1x1xf32, #tpu.memory_space<vmem>>, vector<1x1xf32>,
      %cst_23 = arith.constant 0.000000e+00 : f32
      %43 = vector.broadcast %cst_23 : f32 to vector<1x1xf32>
      %c0_24 = arith.constant 0 : index
      %c0_25 = arith.constant 0 : index
      %44 = vector.load %arg5[%c0_24, %c0_25] : memref<1x1xf32, #tpu.memory_space<vmem>>, vector<1x1xf32>
      tpu.vector_store %arg5[%c0_24, %c0_25], %43 {strides = array<i32>} : memref<1x1xf32, #tpu.memory_space<vmem>>, vector<1x1xf32>,
      %c0_26 = arith.constant 0 : index
      %c0_27 = arith.constant 0 : index
      %45 = vector.load %arg2[%c0_26, %c0_27] : memref<1x16xf32, #tpu.memory_space<vmem>>, vector<1x16xf32>
      %c1 = arith.constant 1 : index
      %c0_28 = arith.constant 0 : index
      %46 = vector.load %arg3[%c1, %c0_28] : memref<2x16xf32, #tpu.memory_space<vmem>>, vector<1x16xf32>
      %47 = arith.mulf %45, %46 : vector<1x16xf32>
      %cst_29 = arith.constant dense<0.000000e+00> : vector<1xf32>
      %48 = vector.multi_reduction <add>, %47, %cst_29 [1] : vector<1x16xf32> to vector<1xf32>
      %49 = vector.shape_cast %48 : vector<1xf32> to vector<1x1xf32>
      %c0_30 = arith.constant 0 : index
      %c0_31 = arith.constant 0 : index
      %50 = vector.load %arg6[%c0_30, %c0_31] : memref<1x1xf32, #tpu.memory_space<vmem>>, vector<1x1xf32>
      tpu.vector_store %arg6[%c0_30, %c0_31], %49 {strides = array<i32>} : memref<1x1xf32, #tpu.memory_space<vmem>>, vector<1x1xf32>,
    } else {
    }
    %c0 = arith.constant 0 : index
    %c0_1 = arith.constant 0 : index
    %3 = vector.load %arg1[%c0, %c0_1] : memref<8x16xf32, #tpu.memory_space<vmem>>, vector<8x16xf32>
    %c0_2 = arith.constant 0 : index
    %c0_3 = arith.constant 0 : index
    %4 = vector.load %arg3[%c0_2, %c0_3] : memref<2x16xf32, #tpu.memory_space<vmem>>, vector<1x16xf32>
    %5 = vector.broadcast %4 : vector<1x16xf32> to vector<8x16xf32>
    %6 = arith.mulf %3, %5 : vector<8x16xf32>
    %cst = arith.constant dense<0.000000e+00> : vector<8xf32>
    %7 = vector.multi_reduction <add>, %6, %cst [1] : vector<8x16xf32> to vector<8xf32>
    %8 = vector.shape_cast %7 : vector<8xf32> to vector<8x1xf32>
    %c0_4 = arith.constant 0 : index
    %c0_5 = arith.constant 0 : index
    %9 = vector.load %arg6[%c0_4, %c0_5] : memref<1x1xf32, #tpu.memory_space<vmem>>, vector<1x1xf32>
    %10 = vector.broadcast %9 : vector<1x1xf32> to vector<8x1xf32>
    %11 = arith.addf %8, %10 : vector<8x1xf32>
    %cst_6 = arith.constant 0.000000e+00 : f32
    %12 = vector.broadcast %cst_6 : f32 to vector<8x1xf32>
    %13 = arith.cmpf ogt, %11, %12 : vector<8x1xf32>
    %cst_7 = arith.constant 2.000000e-01 : f32
    %14 = vector.broadcast %cst_7 : f32 to vector<8x1xf32>
    %15 = arith.mulf %14, %11 : vector<8x1xf32>
    %16 = arith.select %13, %11, %15 : vector<8x1xi1>, vector<8x1xf32>
    %c8_i32 = arith.constant 8 : i32
    %17 = arith.muli %arg0, %c8_i32 : i32
    %18 = tpu.iota {dimensions = array<i32: 0>} : vector<8x1xi32>
    %19 = vector.broadcast %17 : i32 to vector<8x1xi32>
    %20 = arith.addi %19, %18 : vector<8x1xi32>
    %c8_i32_8 = arith.constant 8 : i32
    %21 = vector.broadcast %c8_i32_8 : i32 to vector<8x1xi32>
    %22 = arith.cmpi slt, %20, %21 : vector<8x1xi32>
    %cst_9 = arith.constant -1.000000e+30 : f32
    %23 = vector.broadcast %cst_9 : f32 to vector<8x1xf32>
    %24 = arith.select %22, %16, %23 : vector<8x1xi1>, vector<8x1xf32>
    %c0_10 = arith.constant 0 : index
    %c0_11 = arith.constant 0 : index
    %25 = vector.load %arg4[%c0_10, %c0_11] : memref<1x1xf32, #tpu.memory_space<vmem>>, vector<1x1xf32>
    %cst_12 = arith.constant dense<0xFF800000> : vector<1xf32>
    %26 = vector.multi_reduction <maximumf>, %24, %cst_12 [0] : vector<8x1xf32> to vector<1xf32>
    %27 = vector.shape_cast %26 : vector<1xf32> to vector<1x1xf32>
    %28 = arith.maximumf %25, %27 : vector<1x1xf32>
    %c0_13 = arith.constant 0 : index
    %c0_14 = arith.constant 0 : index
    %29 = vector.load %arg5[%c0_13, %c0_14] : memref<1x1xf32, #tpu.memory_space<vmem>>, vector<1x1xf32>
    %30 = arith.subf %25, %28 : vector<1x1xf32>
    %31 = math.exp %30 : vector<1x1xf32>
    %32 = arith.mulf %29, %31 : vector<1x1xf32>
    %33 = vector.broadcast %28 : vector<1x1xf32> to vector<8x1xf32>
    %34 = arith.subf %24, %33 : vector<8x1xf32>
    %35 = math.exp %34 : vector<8x1xf32>
    %cst_15 = arith.constant dense<0.000000e+00> : vector<1xf32>
    %36 = vector.multi_reduction <add>, %35, %cst_15 [0] : vector<8x1xf32> to vector<1xf32>
    %37 = vector.shape_cast %36 : vector<1xf32> to vector<1x1xf32>
    %38 = arith.addf %32, %37 : vector<1x1xf32>
    %c0_16 = arith.constant 0 : index
    %c0_17 = arith.constant 0 : index
    %39 = vector.load %arg5[%c0_16, %c0_17] : memref<1x1xf32, #tpu.memory_space<vmem>>, vector<1x1xf32>
    tpu.vector_store %arg5[%c0_16, %c0_17], %38 {strides = array<i32>} : memref<1x1xf32, #tpu.memory_space<vmem>>, vector<1x1xf32>,
    %c0_18 = arith.constant 0 : index
    %c0_19 = arith.constant 0 : index
    %40 = vector.load %arg4[%c0_18, %c0_19] : memref<1x1xf32, #tpu.memory_space<vmem>>, vector<1x1xf32>
    tpu.vector_store %arg4[%c0_18, %c0_19], %28 {strides = array<i32>} : memref<1x1xf32, #tpu.memory_space<vmem>>, vector<1x1xf32>,
    return
  }
  func.func @transform_0(%arg0: i32) -> (i32, i32) {
    %c0_i32 = arith.constant 0 : i32
    %c0_i32_0 = arith.constant 0 : i32
    return %arg0, %c0_i32 : i32, i32
  }
  func.func @transform_1(%arg0: i32) -> (i32, i32) {
    %c0_i32 = arith.constant 0 : i32
    %c0_i32_0 = arith.constant 0 : i32
    %c0_i32_1 = arith.constant 0 : i32
    return %c0_i32, %c0_i32_0 : i32, i32
  }
  func.func @transform_2(%arg0: i32) -> (i32, i32) {
    %c0_i32 = arith.constant 0 : i32
    %c0_i32_0 = arith.constant 0 : i32
    %c0_i32_1 = arith.constant 0 : i32
    return %c0_i32, %c0_i32_0 : i32, i32
  }
  func.func @transform_3(%arg0: i32) -> (i32, i32) {
    %c0_i32 = arith.constant 0 : i32
    %c0_i32_0 = arith.constant 0 : i32
    %c0_i32_1 = arith.constant 0 : i32
    return %c0_i32, %c0_i32_0 : i32, i32
  }
  func.func @transform_4(%arg0: i32) -> (i32, i32) {
    %c0_i32 = arith.constant 0 : i32
    %c0_i32_0 = arith.constant 0 : i32
    %c0_i32_1 = arith.constant 0 : i32
    return %c0_i32, %c0_i32_0 : i32, i32
  }
}

</mosaic_0001>

<bundles_post_ra>
// kernel: tpu_custom_call.1
= control target key start
LH: loop header
LB: loop body
LE: loop exit
PB: predicated region body
PF: predicated region fallthrough
CT: control target
= control target key end

     0   :  { %10 = vsyncpa [#allocation4], 0  ;;  %s358_s0 = inlined_call_operand.hbm [shape: f32[8,16], index: 0, kind: input, shape index: {}]   ;;  %s359_s1 = inlined_call_operand.hbm [shape: f32[1,16], index: 1, kind: input, shape index: {}]   ;;  %s360_s2 = inlined_call_operand.hbm [shape: f32[2,16], index: 2, kind: input, shape index: {}]   ;;  %s361_s3 = inlined_call_operand.hbm [shape: f32[1,1], index: 3, kind: output, shape index: {0}]   ;;  %s362_s4 = inlined_call_operand.hbm [shape: f32[1,1], index: 4, kind: output, shape index: {1}]  }
   0x1   :  { %11 = vsyncpa [#allocation7], 0 }
   0x2   :  { %12 = vsyncpa [#allocation5], 0  ;;  %s30_s17 = sshll.u32 %s359_s1, 4  ;;  %s31_s17 = int_to_ptr.hbm [resolvable:$true] %s30_s17 }
   0x3   :  { %13 = vsyncpa [#allocation11], 0  ;;  %s304_s18 = smov [#allocation6]   ;;  %s19_s22 = sshll.u32 %s358_s0, 4  ;;  %s20_s22 = int_to_ptr.hbm [resolvable:$true] %s19_s22 }
   0x4   :  { %s32_s19 = sshll.u32 %s304_s18, 4  ;;  %s305_s23 = smov [#allocation3]   ;;  %s33_s19 = int_to_ptr.vmem [resolvable:$true] %s32_s19 }
   0x5   :  { %35 = dma.hbm_to_vmem [thread:$0]  %s31_s17, 16, %s33_s19, [#allocation7]  }
   0x6   :  { %s21_s24 = sshll.u32 %s305_s23, 4  ;;  %s41_s27 = sshll.u32 %s360_s2, 4  ;;  %s22_s24 = int_to_ptr.vmem [resolvable:$true] %s21_s24  ;;  %s42_s27 = int_to_ptr.hbm [resolvable:$true] %s41_s27 }
   0x7   :  { %24 = dma.hbm_to_vmem [thread:$0]  %s20_s22, 128, %s22_s24, [#allocation4]  }
   0x8   :  { %s306_s1 = smov [#allocation8]  }
   0x9   :  { %s43_s28 = sshll.u32 %s306_s1, 4  ;;  %s44_s28 = int_to_ptr.vmem [resolvable:$true] %s43_s28 }
   0xa   :  { %46 = dma.hbm_to_vmem [thread:$0]  %s42_s27, 32, %s44_s28, [#allocation7]  }
   0xb   :  { %296 = dma.done.wait [#allocation4], 128  }
   0xc   :  { %297 = vsyncadd [#allocation4], 4294967168 }
   0xd   :  { %298 = dma.done.wait [#allocation7], 48  }
   0xe   :  { %299 = vsyncadd [#allocation7], 4294967248  ;;  %vm63_vm0 = vcmask 0   ;;  %v307_v0 = vmov -1e+30   ;;  %vm69_vm1 = vcmask 122880  }
   0xf   :  { %64 = vst.msk [vmem:[#allocation9] sm:$0x1] %vm63_vm0, %v307_v0  ;;  %v66_v1 = vld [vmem:[#allocation6] sm:$0x1]  ;;  %v67_v2 = vld [vmem:[#allocation8 + $0x1] sm:$0x1] }
  0x10   :  { %v68_v3 = vmul.f32 %v67_v2, %v66_v1  ;;  %v170_v4 = vld [vmem:[#allocation8] ss:$0 sm:$0xff]  ;;  %v74_v5 = vld [vmem:[#allocation3] sm:$0xff]  ;;  %vm78_vm2 = vcmask 130048   ;;  %v308_v10 = vmov 0.0   ;;  %vm98_vm3 = vcmask 7168  }
  0x11   :  { %v77_v7 = vmul.f32 %v170_v4, %v74_v5  ;;  %65 = vst.msk [vmem:[#allocation10] sm:$0x1] %vm63_vm0, %v308_v10  ;;  %s309_s0 = smov [#allocation9]   ;;  %s136_s5 = sshll.u32 %s361_s3, 4  ;;  %s137_s5 = int_to_ptr.hbm [resolvable:$true] %s136_s5 }
  0x12   :  { %v70_v6 = vsel %vm69_vm1, %v68_v3, 0.0  ;;  %s134_s2 = sshll.u32 %s309_s0, 4  ;;  %s310_s3 = smov [#allocation10]   ;;  %s135_s2 = int_to_ptr.vmem [resolvable:$true] %s134_s2 }
  0x13   :  { %71 = vadd.xlane.f32.xlu0 %v70_v6  ;;  %v79_v8 = vsel %vm78_vm2, %v77_v7, 0.0  ;;  %s145_s6 = sshll.u32 %s310_s3, 4  ;;  %s147_s9 = sshll.u32 %s362_s4, 4  ;;  %s146_s6 = int_to_ptr.vmem [resolvable:$true] %s145_s6  ;;  %s148_s9 = int_to_ptr.hbm [resolvable:$true] %s147_s9 }
  0x16   :  { %v97_v22 = vld [vmem:[#allocation9] sm:$0x1] }
  0x18   :  { %v107_v37 = vld [vmem:[#allocation10] sm:$0x1] }
  0x1b   :  { %80 = vadd.xlane.f32.xlu0 %v79_v8 }
  0x86   :  { %v72_v9 = vpop.xlane.xlu0 %71 }
  0x87   :  { %73 = vst.msk [vmem:[#allocation2] sm:$0x1] %vm63_vm0, %v72_v9 }
  0x8e   :  { %v171_v11 = vld [vmem:[#allocation2] ss:$0 sm:$0xff]  ;;  %v81_v12 = vpop.xlane.xlu0 %80 }
  0x8f   :  { %v86_v13 = vadd.f32 %v171_v11, %v81_v12 }
  0x91   :  { %vm87_vm4 = vcmp.gt.f32.partialorder %v86_v13, 0.0  ;;  %v88_v14 = vmul.f32 0.2, %v86_v13 }
  0x93   :  { %v89_v15 = vsel %vm87_vm4, %v86_v13, %v88_v14 }
  0x94   :  { %v99_v16 = vsel %vm98_vm3, %v89_v15, -inf }
  0x95   :  { %v100_v17 = vrot.slane %v99_v16, 4 }
  0x97   :  { %v101_v18 = vmax.f32 %v99_v16, %v100_v17 }
  0x99   :  { %v102_v19 = vrot.slane %v101_v18, 2 }
  0x9b   :  { %v103_v20 = vmax.f32 %v101_v18, %v102_v19 }
  0x9d   :  { %v104_v21 = vrot.slane %v103_v20, 1 }
  0x9f   :  { %v105_v23 = vmax.f32 %v103_v20, %v104_v21 }
  0xa1   :  { %v106_v24 = vmax.f32 %v97_v22, %v105_v23 }
  0xa3   :  { %v113_v25 = vperm.slane %v106_v24, 0  ;;  %128 = vst.msk [vmem:[#allocation9] sm:$0x1] %vm63_vm0, %v106_v24  ;;  %v108_v28 = vsub.f32 %v97_v22, %v106_v24 }
  0xa4   :  { %139 = dma.vmem_to_hbm [thread:$0]  %s135_s2, 16, %s137_s5, [#allocation5]  }
  0xa5   :  { %v115_v26 = vsub.f32 %v89_v15, %v113_v25  ;;  %v109_v29 = vmul.f32 1.442695, %v108_v28 }
  0xa7   :  { %v116_v27 = vmul.f32 1.442695, %v115_v26 }
  0xa9   :  { %172 = vpow2.f32 %v116_v27 }
  0xaa   :  { %174 = vpow2.f32 %v109_v29 }
  0xaf   :  { %v173_v30 = vpop.eup %172 }
  0xb0   :  { %v118_v31 = vsel %vm98_vm3, %v173_v30, 0.0  ;;  %v175_v36 = vpop.eup %174 }
  0xb1   :  { %v119_v32 = vrot.slane %v118_v31, 4  ;;  %v111_v40 = vmul.f32 %v175_v36, %v107_v37 }
  0xb3   :  { %v120_v33 = vadd.f32 %v119_v32, %v118_v31 }
  0xb5   :  { %v121_v34 = vrot.slane %v120_v33, 2 }
  0xb7   :  { %v122_v35 = vadd.f32 %v121_v34, %v120_v33 }
  0xb9   :  { %v123_v38 = vrot.slane %v122_v35, 1 }
  0xbb   :  { %v124_v39 = vadd.f32 %v123_v38, %v122_v35 }
  0xbd   :  { %v125_v41 = vadd.f32 %v124_v39, %v111_v40 }
  0xbf   :  { %127 = vst.msk [vmem:[#allocation10] sm:$0x1] %vm63_vm0, %v125_v41 }
  0xc0   :  { %150 = dma.vmem_to_hbm [thread:$0]  %s146_s6, 16, %s148_s9, [#allocation11]  }
  0xc1   :  { %300 = dma.done.wait [#allocation5], 16  }
  0xc2   :  { %301 = vsyncadd [#allocation5], 4294967280 }
  0xc3   :  { %302 = dma.done.wait [#allocation11], 16  }
  0xc4   :  { %303 = vsyncadd [#allocation11], 4294967280 }
  0xc5   :  { %159 = vsyncpa [#allocation4], 1 }
  0xc6   :  { %160 = vsyncpa [#allocation7], 1 }
  0xc7   :  { %161 = vsyncpa [#allocation5], 1 }
  0xc8   :  { %162 = vsyncpa [#allocation11], 1 }

</bundles_post_ra>
